<compile_context>
chip_gen: v7x
topology: tpu7x:2x2x1
jax: 0.10.0
libtpu: 0.0.40
codegen_flags: <defaults>
</compile_context>

<pallas_src>
import functools

import jax
import jax.numpy as jnp
import numpy as np
from jax.experimental import pallas as pl
from jax.experimental.pallas import tpu as pltpu

_LANES = 128       # vreg lane width (fast axis)
_SUBLANES = 8      # f32 sublane count
_ROW_TILE = 1024   # 1024 x 128 elements per grid step
_RESEED = 4        # re-seed direct sin/cos every 4 frequency bands


def _freq_encode_kernel(x_ref, o_ref, *, degree: int):
    """x_ref: (TR, 128) f32; o_ref: (1 + 2*degree, TR, 128) f32, band-major."""
    x = x_ref[...]
    o_ref[0] = x                              # band 0: identity
    s = c = None
    for f in range(degree):
        if f % _RESEED == 0:
            # Direct evaluation (f=0 and every _RESEED-th band) bounds the
            # double-angle recurrence error for large degree.
            xf = x if f == 0 else x * np.float32(2.0 ** f)
            s = jnp.sin(xf)                   # sin(2^f * x)
            c = jnp.cos(xf)                   # cos(2^f * x)
        o_ref[1 + 2 * f] = s                  # band 1+2f: sin(2^f x)
        o_ref[2 + 2 * f] = c                  # band 2+2f: cos(2^f x)
        if f + 1 < degree and (f + 1) % _RESEED != 0:
            # Double-angle: sin(2y) = 2 sin y cos y ; cos(2y) = cos^2 - sin^2
            s, c = 2.0 * s * c, c * c - s * s


def _round_up(x: int, m: int) -> int:
    return (x + m - 1) // m * m


@functools.partial(jax.jit, static_argnames=("input_dim", "degree"))
def _freq_encode(inputs, *, input_dim: int, degree: int):
    prefix_shape = inputs.shape[:-1]
    D = input_dim
    bands = 1 + 2 * degree
    C = D * bands

    x = inputs.reshape(-1, D).astype(jnp.float32)   # custom_fwd cast_inputs=f32
    N = x.shape[0]
    M = N * D
    if M == 0:
        return jnp.zeros(prefix_shape + (C,), jnp.float32)

    # Lane-dense slab: flatten to (rows, 128). Pad only to a lane multiple and
    # only when needed; the [:, :M] slice below discards tail garbage and the
    # partial tail grid block is masked by Pallas (no sublane round-up, no
    # output padding pass).
    rows = _round_up(M, _LANES) // _LANES
    x_flat = x.reshape(-1)
    if M != rows * _LANES:
        x_flat = jnp.pad(x_flat, (0, rows * _LANES - M))
    x2 = x_flat.reshape(rows, _LANES)

    # Aim for >= 2 grid steps when the problem allows it so v7x can shard the
    # "parallel" axis across both TensorCores; cap the tile for VMEM.
    row_tile = min(_ROW_TILE, max(_SUBLANES, _round_up(-(-rows // 2), _SUBLANES)))
    grid = (pl.cdiv(rows, row_tile),)

    out = pl.pallas_call(
        functools.partial(_freq_encode_kernel, degree=degree),
        out_shape=jax.ShapeDtypeStruct((bands, rows, _LANES), jnp.float32),
        grid=grid,
        in_specs=[pl.BlockSpec((row_tile, _LANES), lambda i: (i, 0))],
        out_specs=pl.BlockSpec((bands, row_tile, _LANES), lambda i: (0, i, 0)),
        # Default double-buffering already hides the writeback DMA for this
        # memory-bound kernel; deeper buffering would only cost VMEM.
        compiler_params=pltpu.CompilerParams(
            dimension_semantics=("parallel",),
            vmem_limit_bytes=32 * 1024 * 1024),
    )(x2)

    # Band-major slab -> interleaved (N, C) rows [x | sin f0 | cos f0 | ...].
    # Kept to preserve the module's output layout; consumers that can take the
    # band-major slab directly should do so and skip this extra pass.
    out = out.reshape(bands, rows * _LANES)[:, :M].reshape(bands, N, D)
    out = jnp.moveaxis(out, 0, 1).reshape(N, C)
    return out.reshape(prefix_shape + (C,))


class FreqEncoder:
    """JAX/Pallas port of torch-ngp FreqEncoder (forward only, no parameters)."""
    # TODO(synk): backward pass (freq_encode_backward) not implemented; add a
    #             custom_vjp if this feeds training.

    def __init__(self, input_dim: int = 3, degree: int = 4):
        self.input_dim = input_dim
        self.degree = degree
        self.output_dim = input_dim + input_dim * 2 * degree

    def __repr__(self):
        return (f"FreqEncoder: input_dim={self.input_dim} "
                f"degree={self.degree} output_dim={self.output_dim}")

    def __call__(self, inputs, **kwargs):
        return _freq_encode(inputs, input_dim=self.input_dim,
                            degree=self.degree)


def _reference_freq_encode(x, input_dim, degree):
    # Pure-JAX reference with the CUDA kernel's column order (independent of
    # the kernel's double-angle recurrence).
    prefix = x.shape[:-1]
    x2 = x.reshape(-1, input_dim).astype(jnp.float32)
    parts = [x2]
    for f in range(degree):
        s = x2 * np.float32(2.0 ** f)
        parts.append(jnp.sin(s))
        parts.append(jnp.cos(s))
    out = jnp.concatenate(parts, axis=-1)
    return out.reshape(prefix + (input_dim * (1 + 2 * degree),))


if __name__ == "__main__":
    key = jax.random.PRNGKey(0)
    input_dim, degree = 3, 4
    # Small multi-dim batch; forward flattens prefix dims internally.
    x = jax.random.normal(key, (2, 8, input_dim), dtype=jnp.float32)

    enc = FreqEncoder(input_dim=input_dim, degree=degree)
    y = jax.block_until_ready(enc(x))

    assert y.shape == (2, 8, enc.output_dim), y.shape
    y_ref = _reference_freq_encode(x, input_dim, degree)
    np.testing.assert_allclose(np.asarray(y), np.asarray(y_ref),
                               rtol=2e-5, atol=2e-5)
    print("KERNEL_OK")
</pallas_src>

<mosaic_0001>
module attributes {stable_mosaic.version = 11 : i64} {
  func.func @_freq_encode_kernel(%arg0: i32, %arg1: memref<8x128xf32, #tpu.memory_space<vmem>>, %arg2: memref<9x8x128xf32, #tpu.memory_space<vmem>>) attributes {dimension_semantics = [#tpu.dimension_semantics<parallel>], iteration_bounds = array<i64: 1>, scalar_prefetch = 0 : i64, scratch_operands = 0 : i64, tpu.core_type = #tpu.core_type<tc>, window_params = [{transform_indices = @transform_0, window_bounds = array<i64: 8, 128>}, {transform_indices = @transform_1, window_bounds = array<i64: 9, 8, 128>}]} {
    %c0 = arith.constant 0 : index
    %c0_0 = arith.constant 0 : index
    %0 = vector.load %arg1[%c0, %c0_0] : memref<8x128xf32, #tpu.memory_space<vmem>>, vector<8x128xf32>
    %c0_1 = arith.constant 0 : index
    %c0_2 = arith.constant 0 : index
    %c0_3 = arith.constant 0 : index
    %1 = vector.load %arg2[%c0_1, %c0_2, %c0_3] : memref<9x8x128xf32, #tpu.memory_space<vmem>>, vector<1x8x128xf32>
    %2 = vector.shape_cast %1 : vector<1x8x128xf32> to vector<8x128xf32>
    %3 = vector.shape_cast %0 : vector<8x128xf32> to vector<1x8x128xf32>
    tpu.vector_store %arg2[%c0_1, %c0_2, %c0_3], %3 {strides = array<i32>} : memref<9x8x128xf32, #tpu.memory_space<vmem>>, vector<1x8x128xf32>,
    %4 = math.sin %0 : vector<8x128xf32>
    %5 = math.cos %0 : vector<8x128xf32>
    %c1 = arith.constant 1 : index
    %c0_4 = arith.constant 0 : index
    %c0_5 = arith.constant 0 : index
    %6 = vector.load %arg2[%c1, %c0_4, %c0_5] : memref<9x8x128xf32, #tpu.memory_space<vmem>>, vector<1x8x128xf32>
    %7 = vector.shape_cast %6 : vector<1x8x128xf32> to vector<8x128xf32>
    %8 = vector.shape_cast %4 : vector<8x128xf32> to vector<1x8x128xf32>
    tpu.vector_store %arg2[%c1, %c0_4, %c0_5], %8 {strides = array<i32>} : memref<9x8x128xf32, #tpu.memory_space<vmem>>, vector<1x8x128xf32>,
    %c2 = arith.constant 2 : index
    %c0_6 = arith.constant 0 : index
    %c0_7 = arith.constant 0 : index
    %9 = vector.load %arg2[%c2, %c0_6, %c0_7] : memref<9x8x128xf32, #tpu.memory_space<vmem>>, vector<1x8x128xf32>
    %10 = vector.shape_cast %9 : vector<1x8x128xf32> to vector<8x128xf32>
    %11 = vector.shape_cast %5 : vector<8x128xf32> to vector<1x8x128xf32>
    tpu.vector_store %arg2[%c2, %c0_6, %c0_7], %11 {strides = array<i32>} : memref<9x8x128xf32, #tpu.memory_space<vmem>>, vector<1x8x128xf32>,
    %cst = arith.constant 2.000000e+00 : f32
    %12 = vector.broadcast %cst : f32 to vector<8x128xf32>
    %13 = arith.mulf %12, %4 : vector<8x128xf32>
    %14 = arith.mulf %13, %5 : vector<8x128xf32>
    %15 = arith.mulf %5, %5 : vector<8x128xf32>
    %16 = arith.mulf %4, %4 : vector<8x128xf32>
    %17 = arith.subf %15, %16 : vector<8x128xf32>
    %c3 = arith.constant 3 : index
    %c0_8 = arith.constant 0 : index
    %c0_9 = arith.constant 0 : index
    %18 = vector.load %arg2[%c3, %c0_8, %c0_9] : memref<9x8x128xf32, #tpu.memory_space<vmem>>, vector<1x8x128xf32>
    %19 = vector.shape_cast %18 : vector<1x8x128xf32> to vector<8x128xf32>
    %20 = vector.shape_cast %14 : vector<8x128xf32> to vector<1x8x128xf32>
    tpu.vector_store %arg2[%c3, %c0_8, %c0_9], %20 {strides = array<i32>} : memref<9x8x128xf32, #tpu.memory_space<vmem>>, vector<1x8x128xf32>,
    %c4 = arith.constant 4 : index
    %c0_10 = arith.constant 0 : index
    %c0_11 = arith.constant 0 : index
    %21 = vector.load %arg2[%c4, %c0_10, %c0_11] : memref<9x8x128xf32, #tpu.memory_space<vmem>>, vector<1x8x128xf32>
    %22 = vector.shape_cast %21 : vector<1x8x128xf32> to vector<8x128xf32>
    %23 = vector.shape_cast %17 : vector<8x128xf32> to vector<1x8x128xf32>
    tpu.vector_store %arg2[%c4, %c0_10, %c0_11], %23 {strides = array<i32>} : memref<9x8x128xf32, #tpu.memory_space<vmem>>, vector<1x8x128xf32>,
    %cst_12 = arith.constant 2.000000e+00 : f32
    %24 = vector.broadcast %cst_12 : f32 to vector<8x128xf32>
    %25 = arith.mulf %24, %14 : vector<8x128xf32>
    %26 = arith.mulf %25, %17 : vector<8x128xf32>
    %27 = arith.mulf %17, %17 : vector<8x128xf32>
    %28 = arith.mulf %14, %14 : vector<8x128xf32>
    %29 = arith.subf %27, %28 : vector<8x128xf32>
    %c5 = arith.constant 5 : index
    %c0_13 = arith.constant 0 : index
    %c0_14 = arith.constant 0 : index
    %30 = vector.load %arg2[%c5, %c0_13, %c0_14] : memref<9x8x128xf32, #tpu.memory_space<vmem>>, vector<1x8x128xf32>
    %31 = vector.shape_cast %30 : vector<1x8x128xf32> to vector<8x128xf32>
    %32 = vector.shape_cast %26 : vector<8x128xf32> to vector<1x8x128xf32>
    tpu.vector_store %arg2[%c5, %c0_13, %c0_14], %32 {strides = array<i32>} : memref<9x8x128xf32, #tpu.memory_space<vmem>>, vector<1x8x128xf32>,
    %c6 = arith.constant 6 : index
    %c0_15 = arith.constant 0 : index
    %c0_16 = arith.constant 0 : index
    %33 = vector.load %arg2[%c6, %c0_15, %c0_16] : memref<9x8x128xf32, #tpu.memory_space<vmem>>, vector<1x8x128xf32>
    %34 = vector.shape_cast %33 : vector<1x8x128xf32> to vector<8x128xf32>
    %35 = vector.shape_cast %29 : vector<8x128xf32> to vector<1x8x128xf32>
    tpu.vector_store %arg2[%c6, %c0_15, %c0_16], %35 {strides = array<i32>} : memref<9x8x128xf32, #tpu.memory_space<vmem>>, vector<1x8x128xf32>,
    %cst_17 = arith.constant 2.000000e+00 : f32
    %36 = vector.broadcast %cst_17 : f32 to vector<8x128xf32>
    %37 = arith.mulf %36, %26 : vector<8x128xf32>
    %38 = arith.mulf %37, %29 : vector<8x128xf32>
    %39 = arith.mulf %29, %29 : vector<8x128xf32>
    %40 = arith.mulf %26, %26 : vector<8x128xf32>
    %41 = arith.subf %39, %40 : vector<8x128xf32>
    %c7 = arith.constant 7 : index
    %c0_18 = arith.constant 0 : index
    %c0_19 = arith.constant 0 : index
    %42 = vector.load %arg2[%c7, %c0_18, %c0_19] : memref<9x8x128xf32, #tpu.memory_space<vmem>>, vector<1x8x128xf32>
    %43 = vector.shape_cast %42 : vector<1x8x128xf32> to vector<8x128xf32>
    %44 = vector.shape_cast %38 : vector<8x128xf32> to vector<1x8x128xf32>
    tpu.vector_store %arg2[%c7, %c0_18, %c0_19], %44 {strides = array<i32>} : memref<9x8x128xf32, #tpu.memory_space<vmem>>, vector<1x8x128xf32>,
    %c8 = arith.constant 8 : index
    %c0_20 = arith.constant 0 : index
    %c0_21 = arith.constant 0 : index
    %45 = vector.load %arg2[%c8, %c0_20, %c0_21] : memref<9x8x128xf32, #tpu.memory_space<vmem>>, vector<1x8x128xf32>
    %46 = vector.shape_cast %45 : vector<1x8x128xf32> to vector<8x128xf32>
    %47 = vector.shape_cast %41 : vector<8x128xf32> to vector<1x8x128xf32>
    tpu.vector_store %arg2[%c8, %c0_20, %c0_21], %47 {strides = array<i32>} : memref<9x8x128xf32, #tpu.memory_space<vmem>>, vector<1x8x128xf32>,
    return
  }
  func.func @transform_0(%arg0: i32) -> (i32, i32) {
    %c0_i32 = arith.constant 0 : i32
    %c0_i32_0 = arith.constant 0 : i32
    return %arg0, %c0_i32 : i32, i32
  }
  func.func @transform_1(%arg0: i32) -> (i32, i32, i32) {
    %c0_i32 = arith.constant 0 : i32
    %c0_i32_0 = arith.constant 0 : i32
    %c0_i32_1 = arith.constant 0 : i32
    return %c0_i32, %arg0, %c0_i32_0 : i32, i32, i32
  }
}

</mosaic_0001>

<bundles_post_ra>
// kernel: _freq_encode.1
= control target key start
LH: loop header
LB: loop body
LE: loop exit
PB: predicated region body
PF: predicated region fallthrough
CT: control target
= control target key end

     0   :  { %v349_v13 = vmov 683565275   ;;  %v350_v15 = vmov 2475754826   ;;  %v351_v17 = vmov 2131351028   ;;  %s417_s0 = inlined_call_operand.vmem [shape: f32[1,128], index: 0, kind: input, shape index: {}]   ;;  %s418_s1 = inlined_call_operand.vmem [shape: f32[9,1,128], index: 1, kind: output, shape index: {}]  }
   0x1   :  { %v368_v0 = vld [vmem:[%s417_s0] sm:$0xff]  ;;  %v352_v19 = vmov 2102212464   ;;  %v353_v21 = vmov 920167782  }
   0x2   :  { %9 = vst [vmem:[#allocation2] sm:$0xff] %v368_v0  ;;  %v13_v1 = vand.u32 2139095040, %v368_v0  ;;  %v10_v3 = vand.u32 2147483647, %v368_v0  ;;  %v354_v28 = vmov 1326507024   ;;  %vm102_vm15 = vweird.f32 %v368_v0 }
   0x3   :  { %vm12_vm7 = vcmp.lt.s32.totalorder %v368_v0, 0 }
   0x4   :  { %v14_v2 = vshrl.u32 %v13_v1, 23  ;;  %v17_v6 = vand.u32 8388607, %v10_v3  ;;  %vm11_vm8 = vcmp.le.f32.partialorder %v10_v3, 0.7853982 }
   0x6   :  { %v327_v4 = vadd.s32 4294967169, %v14_v2  ;;  %v18_v11 = vor.u32 8388608, %v17_v6 }
   0x8   :  { %v20_v5 = vadd.s32 1, %v327_v4  ;;  %v58_v30 = vshll.u32 %v18_v11, 8 }
   0x9   :  { %v265_v7 = vld [vmem:[#allocation2] sm:$0x1] }
   0xa   :  { %vm21_vm0 = vcmp.gt.s32.totalorder %v20_v5, 0  ;;  %266 = vst [vmem:[%s418_s1] sm:$0x1] %v265_v7 }
   0xb   :  { %v22_v8 = vsel %vm21_vm0, %v20_v5, 0 }
   0xc   :  { %v24_v9 = vand.u32 31, %v22_v8  ;;  %v23_v10 = vshrl.u32 %v22_v8, 5 }
   0xe   :  { %v25_v12 = vsub.s32 32, %v24_v9  ;;  %v27_v14 = vshll.u32 %v349_v13, %v24_v9  ;;  %v30_v16 = vshll.u32 %v350_v15, %v24_v9  ;;  %v33_v18 = vshll.u32 %v351_v17, %v24_v9 }
   0xf   :  { %v36_v20 = vshll.u32 %v352_v19, %v24_v9  ;;  %v39_v22 = vshll.u32 %v353_v21, %v24_v9  ;;  %vm42_vm1 = vcmp.lt.s32.totalorder %v23_v10, 1  ;;  %vm45_vm2 = vcmp.lt.s32.totalorder %v23_v10, 4 }
  0x10   :  { %v26_v23 = vshrl.u32 %v349_v13, %v25_v12  ;;  %v28_v24 = vshrl.u32 %v350_v15, %v25_v12  ;;  %v31_v25 = vshrl.u32 %v351_v17, %v25_v12  ;;  %v34_v26 = vshrl.u32 %v352_v19, %v25_v12 }
  0x11   :  { %v37_v27 = vshrl.u32 %v353_v21, %v25_v12  ;;  %v40_v29 = vshrl.u32 %v354_v28, %v25_v12  ;;  %vm43_vm3 = vcmp.lt.s32.totalorder %v23_v10, 2  ;;  %vm44_vm4 = vcmp.lt.s32.totalorder %v23_v10, 3 }
  0x12   :  { %v29_v31 = vor.u32 %v28_v24, %v27_v14  ;;  %v32_v32 = vor.u32 %v31_v25, %v30_v16  ;;  %v35_v33 = vor.u32 %v34_v26, %v33_v18 }
  0x13   :  { %v38_v34 = vor.u32 %v37_v27, %v36_v20  ;;  %v41_v35 = vor.u32 %v40_v29, %v39_v22 }
  0x14   :  { %v46_v36 = vsel %vm42_vm1, %v26_v23, %v29_v31  ;;  %v47_v37 = vsel %vm45_vm2, %v35_v33, 2102212464  ;;  %v50_v38 = vsel %vm42_vm1, %v29_v31, %v32_v32  ;;  %v54_v39 = vsel %vm42_vm1, %v32_v32, %v35_v33 }
  0x15   :  { %v48_v40 = vsel %vm44_vm4, %v32_v32, %v47_v37  ;;  %v51_v41 = vsel %vm45_vm2, %v38_v34, 920167782  ;;  %v55_v42 = vsel %vm45_vm2, %v41_v35, 1326507024 }
  0x16   :  { %v52_v43 = vsel %vm44_vm4, %v35_v33, %v51_v41  ;;  %v56_v44 = vsel %vm44_vm4, %v38_v34, %v55_v42  ;;  %v49_v45 = vsel %vm43_vm3, %v46_v36, %v48_v40 }
  0x17   :  { %v53_v46 = vsel %vm43_vm3, %v50_v38, %v52_v43  ;;  %v57_v47 = vsel %vm43_vm3, %v54_v39, %v56_v44  ;;  %v65_v52 = vmul.u32 %v58_v30, %v49_v45 }
  0x18   :  { %v378_v48 = vmul.u32.u64.low %v58_v30, %v57_v47  ;;  %v379_v49 = vmul.u32.u64.high %v58_v30, %v57_v47, %v378_v48  ;;  %v381_v50 = vmul.u32.u64.low %v58_v30, %v53_v46  ;;  %v382_v51 = vmul.u32.u64.high %v58_v30, %v53_v46, %v381_v50 }
  0x1a   :  { %vm67_vm5 = vc.u32 %v379_v49, %v381_v50  ;;  %v68_v53 = vadd.s32 1, %v382_v51  ;;  %v66_v1 = vadd.s32 %v381_v50, %v379_v49 }
  0x1c   :  { %v69_v54 = vsel %vm67_vm5, %v68_v53, %v382_v51 }
  0x1d   :  { %v70_v55 = vadd.s32 %v69_v54, %v65_v52 }
  0x1f   :  { %v71_v56 = vadd.s32 536870912, %v70_v55 }
  0x21   :  { %v72_v57 = vshrl.u32 %v71_v56, 30 }
  0x23   :  { %v73_v58 = vshll.u32 %v72_v57, 30  ;;  %v96_v14 = vsub.s32 4, %v72_v57 }
  0x25   :  { %v74_v59 = vsub.s32 %v70_v55, %v73_v58  ;;  %v97_v17 = vsel %vm12_vm7, %v96_v14, %v72_v57 }
  0x26   :  { %v99_v20 = vsel %vm11_vm8, 0, %v97_v17 }
  0x27   :  { %v76_v60 = vsub.s32 0, %v74_v59  ;;  %v103_v21 = vadd.s32 3, %v99_v20  ;;  %v207_v23 = vand.u32 3, %v99_v20 }
  0x29   :  { %v328_v61 = vmin.u32 %v76_v60, %v74_v59  ;;  %v104_v22 = vand.u32 3, %v103_v21  ;;  %vm212_vm10 = vcmp.eq.s32.totalorder %v207_v23, 2  ;;  %vm209_vm12 = vcmp.eq.s32.totalorder %v207_v23, 0 }
  0x2a   :  { %vm208_vm14 = vcmp.lt.s32.totalorder %v207_v23, 2 }
  0x2b   :  { %v78_v62 = vclz %v328_v61  ;;  %vm109_vm9 = vcmp.eq.s32.totalorder %v104_v22, 2  ;;  %vm106_vm11 = vcmp.eq.s32.totalorder %v104_v22, 0  ;;  %vm105_vm13 = vcmp.lt.s32.totalorder %v104_v22, 2 }
  0x2d   :  { %v329_v63 = vadd.s32 4294967294, %v78_v62 }
  0x2f   :  { %vm330_vm6 = vcmp.lt.s32.totalorder %v329_v63, 0 }
  0x30   :  { %v81_v2 = vsel %vm330_vm6, 0, %v329_v63 }
  0x31   :  { %v82_v4 = vsub.s32 32, %v81_v2  ;;  %v83_v5 = vshll.u32 %v74_v59, %v81_v2  ;;  %v86_v6 = vsub.s32 4294967266, %v81_v2 }
  0x33   :  { %v84_v7 = vshrl.u32 %v66_v1, %v82_v4  ;;  %v87_v8 = vadd.s32 127, %v86_v6 }
  0x35   :  { %v85_v9 = vor.u32 %v84_v7, %v83_v5  ;;  %v88_v10 = vshll.u32 %v87_v8, 23 }
  0x37   :  { %v89_v11 = vor.u32 4788187, %v88_v10  ;;  %v92_v12 = vcvt.s32.f32 %v85_v9 }
  0x39   :  { %v90_v13 = vand.u32 2147483647, %v89_v11 }
  0x3b   :  { %v93_v15 = vmul.f32 %v92_v12, %v90_v13 }
  0x3d   :  { %v94_v16 = vxor.u32 2147483648, %v93_v15 }
  0x3f   :  { %v95_v18 = vsel %vm12_vm7, %v94_v16, %v93_v15 }
  0x40   :  { %v98_v19 = vsel %vm11_vm8, %v368_v0, %v95_v18 }
  0x41   :  { %345 = vcosq.f32 %v98_v19 }
  0x42   :  { %347 = vsinq.f32 %v98_v19 }
  0x4b   :  { %v346_v24 = vpop.eup %345 }
  0x4c   :  { %v348_v25 = vpop.eup %347  ;;  %v110_v26 = vxor.u32 2147483648, %v346_v24 }
  0x4d   :  { %v107_v3 = vxor.u32 2147483648, %v348_v25 }
  0x4e   :  { %v111_v27 = vsel %vm109_vm9, %v110_v26, %v348_v25  ;;  %v214_v28 = vsel %vm212_vm10, %v110_v26, %v348_v25 }
  0x4f   :  { %v108_v29 = vsel %vm106_vm11, %v346_v24, %v107_v3  ;;  %v211_v30 = vsel %vm209_vm12, %v346_v24, %v107_v3 }
  0x50   :  { %v112_v31 = vsel %vm105_vm13, %v108_v29, %v111_v27  ;;  %v215_v32 = vsel %vm208_vm14, %v211_v30, %v214_v28 }
  0x51   :  { %v113_v33 = vsel %vm102_vm15, nan, %v112_v31  ;;  %v216_v34 = vsel %vm102_vm15, nan, %v215_v32 }
  0x52   :  { %218 = vst [vmem:[#allocation2 + $0x8] sm:$0xff] %v113_v33  ;;  %v221_v35 = vmul.f32 2.0, %v113_v33  ;;  %v224_v36 = vmul.f32 %v113_v33, %v113_v33  ;;  %220 = vst [vmem:[#allocation2 + $0x10] sm:$0xff] %v216_v34  ;;  %v223_v37 = vmul.f32 %v216_v34, %v216_v34 }
  0x54   :  { %v222_v38 = vmul.f32 %v221_v35, %v216_v34  ;;  %v225_v39 = vsub.f32 %v223_v37, %v224_v36 }
  0x56   :  { %227 = vst [vmem:[#allocation2 + $0x18] sm:$0xff] %v222_v38  ;;  %229 = vst [vmem:[#allocation2 + $0x20] sm:$0xff] %v225_v39  ;;  %v230_v40 = vmul.f32 2.0, %v222_v38  ;;  %v232_v41 = vmul.f32 %v225_v39, %v225_v39  ;;  %v233_v0 = vmul.f32 %v222_v38, %v222_v38 }
  0x58   :  { %v231_v42 = vmul.f32 %v230_v40, %v225_v39  ;;  %v234_v43 = vsub.f32 %v232_v41, %v233_v0 }
  0x59   :  { %v267_v44 = vld [vmem:[#allocation2 + $0x8] sm:$0x1]  ;;  %v269_v45 = vld [vmem:[#allocation2 + $0x10] sm:$0x1] }
  0x5a   :  { %236 = vst [vmem:[#allocation2 + $0x28] sm:$0xff] %v231_v42  ;;  %238 = vst [vmem:[#allocation2 + $0x30] sm:$0xff] %v234_v43  ;;  %v239_v46 = vmul.f32 2.0, %v231_v42  ;;  %v241_v47 = vmul.f32 %v234_v43, %v234_v43  ;;  %v242_v48 = vmul.f32 %v231_v42, %v231_v42 }
  0x5b   :  { %268 = vst [vmem:[%s418_s1 + $0x1] sm:$0x1] %v267_v44  ;;  %270 = vst [vmem:[%s418_s1 + $0x2] sm:$0x1] %v269_v45 }
  0x5c   :  { %v240_v49 = vmul.f32 %v239_v46, %v234_v43  ;;  %v243_v50 = vsub.f32 %v241_v47, %v242_v48 }
  0x5d   :  { %v271_v51 = vld [vmem:[#allocation2 + $0x18] sm:$0x1]  ;;  %v273_v52 = vld [vmem:[#allocation2 + $0x20] sm:$0x1] }
  0x5e   :  { %245 = vst [vmem:[#allocation2 + $0x38] sm:$0xff] %v240_v49  ;;  %247 = vst [vmem:[#allocation2 + $0x40] sm:$0xff] %v243_v50 }
  0x5f   :  { %272 = vst [vmem:[%s418_s1 + $0x3] sm:$0x1] %v271_v51  ;;  %274 = vst [vmem:[%s418_s1 + $0x4] sm:$0x1] %v273_v52 }
  0x61   :  { %v275_v53 = vld [vmem:[#allocation2 + $0x28] sm:$0x1]  ;;  %v277_v54 = vld [vmem:[#allocation2 + $0x30] sm:$0x1] }
  0x62   :  { %276 = vst [vmem:[%s418_s1 + $0x5] sm:$0x1] %v275_v53  ;;  %278 = vst [vmem:[%s418_s1 + $0x6] sm:$0x1] %v277_v54 }
  0x65   :  { %v279_v55 = vld [vmem:[#allocation2 + $0x38] sm:$0x1]  ;;  %v281_v56 = vld [vmem:[#allocation2 + $0x40] sm:$0x1] }
  0x66   :  { %280 = vst [vmem:[%s418_s1 + $0x7] sm:$0x1] %v279_v55  ;;  %282 = vst [vmem:[%s418_s1 + $0x8] sm:$0x1] %v281_v56 }

</bundles_post_ra>
